<compile_context>
chip_gen: v7x
topology: tpu7x:2x2x1
jax: 0.10.0
libtpu: 0.0.40
codegen_flags: <defaults>
</compile_context>

<pallas_src>
import functools

import jax
import jax.numpy as jnp
from jax.experimental import pallas as pl
from jax.experimental.pallas import tpu as pltpu


# ----------------------------------------------------------------------------
# Trace-time (static) helpers
# ----------------------------------------------------------------------------
def _is_small_mxu():
    """True on parts with a 128-wide MXU (v2-v5): keep Cout tiles at 128."""
    try:
        kind = jax.devices()[0].device_kind.lower()
    except Exception:
        return False
    return any(t in kind for t in ("v2", "v3", "v4", "v5"))


def _pick_th(ho, wo, wh, c, itemsize, target_m=1024, x_tile_budget=12 << 20):
    """Output-row tile: TH | Ho, TH*Wo ~ target_m, prefer multiples of 8."""
    want = max(1, target_m // max(wo, 1))
    want = min(want, max(1, x_tile_budget // max(4 * wh * c * itemsize, 1)))
    if ho <= want:
        return ho
    best = None
    for d in range(min(ho, want), 0, -1):
        if ho % d == 0:
            if d % 8 == 0:
                return d
            if best is None:
                best = d
    return best if best is not None else ho


def _pick_tm(m, row_bytes, target_bytes=3 << 20):
    """Pool row tile: divisor of m, ~target_bytes per input tile, mult of 8."""
    want = max(8, target_bytes // max(row_bytes, 1))
    if m <= want:
        return m
    for d in range(min(m, want), 0, -1):
        if m % d == 0 and d % 8 == 0:
            return d
    return m  # full dim is always layout-legal


# ----------------------------------------------------------------------------
# Kernels
# ----------------------------------------------------------------------------
def _conv3x3_s2_kernel(x_ref, xh_ref, w_ref, b_ref, o_ref):
    """3x3 stride-2 conv; one (batch, Cout-tile, output-row-tile) grid step.

    x_ref  : (2, 2, TH, Wh, C)  split-leading, channels-last row tile:
                                x_ref[eh, ew, t, j, c] = padded[2*(r0+t)+eh, 2j+ew, c]
    xh_ref : (1, 2, 1, Wh, C)   halo: even-plane row r0+TH (both ew planes)
    w_ref  : (3, 3, C, TN)      weight tile, layout (kh, kw, Cin, Cout-tile)
    b_ref  : (1, TN)            bias tile
    o_ref  : (TH, Wo, TN)       output rows [r0, r0+TH)
    """
    TH, Wo, TN = o_ref.shape
    C = x_ref.shape[-1]

    # Bias folded into the f32 accumulator init.
    acc = jnp.broadcast_to(b_ref[...].astype(jnp.float32), (TH * Wo, TN))

    # Even-plane rows shifted down by one (needed by the kh == 2 taps); the
    # last row comes from the 1-row halo block.
    halo = xh_ref[0]                                  # (2, 1, Wh, C)
    if TH > 1:
        ev_next = jnp.concatenate(
            [x_ref[0, :, pl.ds(1, TH - 1), :, :], halo], axis=1)
    else:
        ev_next = halo                                # (2, TH, Wh, C)

    # Output (t, ow) reads padded rows 2*(r0+t)+kh and cols 2*ow+kw.
    #   kh=0 -> even-plane row t, kh=1 -> odd-plane row t,
    #   kh=2 -> even-plane row t+1 (ev_next).  All slices are static.
    for kh in range(3):
        ph, eh = divmod(kh, 2)
        for kw in range(3):
            pw, ew = divmod(kw, 2)
            if ph == 0:
                patch = x_ref[eh, ew, :, pl.ds(pw, Wo), :]
            else:
                patch = ev_next[ew, :, pw:pw + Wo, :]
            acc = acc + jnp.dot(
                patch.reshape(TH * Wo, C), w_ref[kh, kw],
                preferred_element_type=jnp.float32)

    o_ref[...] = acc.reshape(TH, Wo, TN).astype(o_ref.dtype)


def _avgpool2_kernel(x_ref, q_ref, o_ref):
    """2x2 stride-2 average pool; one row-block per grid step.

    x_ref : (TM, 4*Wo)   each row = [input row 2i | input row 2i+1]
    q_ref : (2*Wo, Wo)   constant 0.25-weighted column-pairing matrix
    o_ref : (TM, Wo)
    """
    Wo = o_ref.shape[1]
    a = x_ref[:, : 2 * Wo] + x_ref[:, 2 * Wo:]        # vertical pair add (VPU)
    o_ref[...] = jnp.dot(
        a, q_ref[...], preferred_element_type=jnp.float32).astype(o_ref.dtype)


# ----------------------------------------------------------------------------
# Wrapper
# ----------------------------------------------------------------------------
@functools.partial(jax.jit, static_argnames=("use_conv", "compute_dtype"))
def downsample(x_nchw, w, b, *, use_conv, compute_dtype=None):
    """Downsample forward.

    x_nchw : (N, C, H, W)
    w      : (3, 3, C, C)  conv weight, layout (kh, kw, Cin, Cout)
                           (= PyTorch (O, I, kh, kw) transposed to (2, 3, 1, 0))
    b      : (C,)          conv bias.  w/b ignored when use_conv=False.
    compute_dtype : matmul operand dtype for the conv path.  None = auto
                    (bfloat16 when x is float32, else x's dtype); pass
                    jnp.float32 to force full-precision operands.
    """
    N, C, H, W = x_nchw.shape
    out_dtype = x_nchw.dtype

    if use_conv:
        Ho = (H - 1) // 2 + 1
        Wo = (W - 1) // 2 + 1
        Hh, Wh = Ho + 1, Wo + 1                        # half-extents, padded

        if compute_dtype is None:
            cdt = jnp.bfloat16 if x_nchw.dtype == jnp.float32 else x_nchw.dtype
        else:
            cdt = jnp.dtype(compute_dtype)
        isize = jnp.dtype(cdt).itemsize
        osize = jnp.dtype(out_dtype).itemsize

        xw = x_nchw.astype(cdt)
        wk = w.astype(cdt)
        bk = b.reshape(1, C)

        # Merged zero pad (top/left 1, bottom/right so the even/odd split is
        # exact), then a free reshape + one transpose to split-leading,
        # channels-last: xs[n, eh, ew, i, j, c] = padded[2i+eh, 2j+ew, c].
        xp = jnp.pad(xw, ((0, 0), (0, 0),
                          (1, 2 * Hh - H - 1), (1, 2 * Wh - W - 1)))
        xs = jnp.transpose(xp.reshape(N, C, Hh, 2, Wh, 2), (0, 3, 5, 2, 4, 1))

        # Cout tile: 128 on 128-wide-MXU parts (v2-v5), else 256 when C allows.
        if C % 128 != 0:
            TN = C
        elif _is_small_mxu() or C % 256 != 0:
            TN = 128
        else:
            TN = 256

        # Adaptive output-row tile.
        TH = _pick_th(Ho, Wo, Wh, C, isize)

        # VMEM budget: double-buffered blocks + the live f32 accumulator.
        req = (2 * 4 * TH * Wh * C * isize        # streamed x row tile
               + 2 * 2 * Wh * C * isize           # 1-row halo
               + 2 * 9 * C * TN * isize           # weight tile
               + 2 * TN * isize                   # bias tile
               + 2 * TH * Wo * TN * osize         # output tile
               + TH * Wo * TN * 4)                # f32 accumulator (spills)
        vmem_limit = int(min(64 << 20, max(32 << 20, 2 * req)))

        out = pl.pallas_call(
            _conv3x3_s2_kernel,
            out_shape=jax.ShapeDtypeStruct((N, Ho, Wo, C), out_dtype),
            grid=(N, C // TN, Ho // TH),
            in_specs=[
                # Streamed row tile: rows [r*TH, r*TH+TH) of both planes.
                pl.BlockSpec((None, 2, 2, TH, Wh, C),
                             lambda n, co, r: (n, 0, 0, r, 0, 0)),
                # 1-row halo: even-plane row (r+1)*TH (block size 1 along Hh,
                # so the block index is the element row index).
                pl.BlockSpec((None, 1, 2, 1, Wh, C),
                             lambda n, co, r: (n, 0, 0, (r + 1) * TH, 0, 0)),
                # Weights / bias stay resident across the (fastest) row axis.
                pl.BlockSpec((3, 3, C, TN), lambda n, co, r: (0, 0, 0, co)),
                pl.BlockSpec((1, TN), lambda n, co, r: (0, co)),
            ],
            out_specs=pl.BlockSpec((None, TH, Wo, TN),
                                   lambda n, co, r: (n, r, 0, co)),
            compiler_params=pltpu.CompilerParams(
                dimension_semantics=("parallel", "parallel", "parallel"),
                vmem_limit_bytes=vmem_limit,
            ),
        )(xs, xs, wk, bk)
        # TODO(synk): fuse this NHWC->NCHW transpose into the kernel out_spec.
        return jnp.transpose(out, (0, 3, 1, 2))

    # ---- AvgPool2d(2): stays in NCHW, zero wrapper transposes --------------
    Ho, Wo = H // 2, W // 2
    x = x_nchw
    if (H != 2 * Ho) or (W != 2 * Wo):                 # PyTorch floor mode
        x = x[:, :, : 2 * Ho, : 2 * Wo]
    # Free reshape: row (n*C*Ho + c*Ho + i) = [orig row 2i | orig row 2i+1].
    M = N * C * Ho
    x2 = x.reshape(M, 4 * Wo)

    # Constant pairing matrix, hoisted out of the kernel: q[w, j] = 0.25 if
    # w // 2 == j else 0.  0.25 is exact in bf16, so keep x's dtype.
    q = (0.25 * jnp.repeat(jnp.eye(Wo, dtype=jnp.float32), 2, axis=0)
         ).astype(x.dtype)

    row_bytes = 4 * Wo * jnp.dtype(x.dtype).itemsize
    TM = _pick_tm(M, row_bytes)

    out2 = pl.pallas_call(
        _avgpool2_kernel,
        out_shape=jax.ShapeDtypeStruct((M, Wo), out_dtype),
        grid=(M // TM,),
        in_specs=[pl.BlockSpec((TM, 4 * Wo), lambda m: (m, 0)),
                  pl.BlockSpec((2 * Wo, Wo), lambda m: (0, 0))],
        out_specs=pl.BlockSpec((TM, Wo), lambda m: (m, 0)),
        compiler_params=pltpu.CompilerParams(
            dimension_semantics=("parallel",)),
    )(x2, q)
    return out2.reshape(N, C, Ho, Wo)


# ----------------------------------------------------------------------------
# Demo / self-check
# ----------------------------------------------------------------------------
if __name__ == "__main__":
    key = jax.random.PRNGKey(0)
    kx, kw, kb = jax.random.split(key, 3)

    N, C, H, W = 2, 4, 16, 16
    x = jax.random.normal(kx, (N, C, H, W), jnp.float32)

    # Synthetic Conv2d(C, C, 3, 3) params; weight layout (kh, kw, Cin, Cout).
    w = jax.random.normal(kw, (3, 3, C, C), jnp.float32) * 0.1
    b = jax.random.normal(kb, (C,), jnp.float32) * 0.1

    w_oihw = jnp.transpose(w, (3, 2, 0, 1))                        # (O, I, kh, kw)
    ref_conv = jax.lax.conv_general_dilated(
        x, w_oihw, window_strides=(2, 2), padding=((1, 1), (1, 1)),
        dimension_numbers=("NCHW", "OIHW", "NCHW"),
    ) + b.reshape(1, C, 1, 1)

    # --- use_conv = True, default (bf16 operands, f32 accumulation) --------
    y_conv = jax.block_until_ready(downsample(x, w, b, use_conv=True))
    assert y_conv.shape == (N, C, H // 2, W // 2)
    assert jnp.allclose(y_conv, ref_conv, atol=1e-1, rtol=5e-2), (
        float(jnp.max(jnp.abs(y_conv - ref_conv))))

    # --- use_conv = True, forced f32 operands (tight tolerance) ------------
    y_conv32 = jax.block_until_ready(
        downsample(x, w, b, use_conv=True, compute_dtype=jnp.float32))
    assert jnp.allclose(y_conv32, ref_conv, atol=1e-4, rtol=1e-4), (
        float(jnp.max(jnp.abs(y_conv32 - ref_conv))))

    # --- use_conv = False ---------------------------------------------------
    y_pool = jax.block_until_ready(downsample(x, w, b, use_conv=False))
    ref_pool = x.reshape(N, C, H // 2, 2, W // 2, 2).mean(axis=(3, 5))
    assert y_pool.shape == (N, C, H // 2, W // 2)
    assert jnp.allclose(y_pool, ref_pool, atol=1e-5, rtol=1e-5)

    print("KERNEL_OK")
</pallas_src>

<mosaic_0001>
module attributes {stable_mosaic.version = 11 : i64} {
  func.func @_conv3x3_s2_kernel(%arg0: i32, %arg1: i32, %arg2: i32, %arg3: memref<1x2x2x8x9x4xbf16, #tpu.memory_space<vmem>>, %arg4: memref<1x1x2x1x9x4xbf16, #tpu.memory_space<vmem>>, %arg5: memref<3x3x4x4xbf16, #tpu.memory_space<vmem>>, %arg6: memref<1x4xf32, #tpu.memory_space<vmem>>, %arg7: memref<1x8x8x4xf32, #tpu.memory_space<vmem>>) attributes {dimension_semantics = [#tpu.dimension_semantics<parallel>, #tpu.dimension_semantics<parallel>, #tpu.dimension_semantics<parallel>], iteration_bounds = array<i64: 2, 1, 1>, scalar_prefetch = 0 : i64, scratch_operands = 0 : i64, tpu.core_type = #tpu.core_type<tc>, window_params = [{transform_indices = @transform_0, window_bounds = array<i64: 1, 2, 2, 8, 9, 4>}, {transform_indices = @transform_1, window_bounds = array<i64: 1, 1, 2, 1, 9, 4>}, {transform_indices = @transform_2, window_bounds = array<i64: 3, 3, 4, 4>}, {transform_indices = @transform_3, window_bounds = array<i64: 1, 4>}, {transform_indices = @transform_4, window_bounds = array<i64: 1, 8, 8, 4>}]} {
    %c0 = arith.constant 0 : index
    %c0_0 = arith.constant 0 : index
    %0 = vector.load %arg6[%c0, %c0_0] : memref<1x4xf32, #tpu.memory_space<vmem>>, vector<1x4xf32>
    %1 = vector.shape_cast %0 : vector<1x4xf32> to vector<1x4xf32>
    %2 = vector.broadcast %1 : vector<1x4xf32> to vector<64x4xf32>
    %c0_1 = arith.constant 0 : index
    %c0_2 = arith.constant 0 : index
    %c0_3 = arith.constant 0 : index
    %c0_4 = arith.constant 0 : index
    %c0_5 = arith.constant 0 : index
    %c0_6 = arith.constant 0 : index
    %3 = vector.load %arg4[%c0_1, %c0_2, %c0_3, %c0_4, %c0_5, %c0_6] : memref<1x1x2x1x9x4xbf16, #tpu.memory_space<vmem>>, vector<1x1x2x1x9x4xbf16>
    %4 = vector.shape_cast %3 : vector<1x1x2x1x9x4xbf16> to vector<2x1x9x4xbf16>
    %c0_7 = arith.constant 0 : index
    %c0_8 = arith.constant 0 : index
    %c0_9 = arith.constant 0 : index
    %c1 = arith.constant 1 : index
    %c0_10 = arith.constant 0 : index
    %c0_11 = arith.constant 0 : index
    %5 = vector.load %arg3[%c0_7, %c0_8, %c0_9, %c1, %c0_10, %c0_11] : memref<1x2x2x8x9x4xbf16, #tpu.memory_space<vmem>>, vector<1x1x2x7x9x4xbf16>
    %6 = vector.shape_cast %5 : vector<1x1x2x7x9x4xbf16> to vector<2x7x9x4xbf16>
    %7 = tpu.concatenate %6, %4 in 1 : vector<2x7x9x4xbf16>, vector<2x1x9x4xbf16> -> vector<2x8x9x4xbf16>
    %c0_12 = arith.constant 0 : index
    %c0_13 = arith.constant 0 : index
    %c0_14 = arith.constant 0 : index
    %c0_15 = arith.constant 0 : index
    %c0_16 = arith.constant 0 : index
    %c0_17 = arith.constant 0 : index
    %8 = vector.load %arg3[%c0_12, %c0_13, %c0_14, %c0_15, %c0_16, %c0_17] : memref<1x2x2x8x9x4xbf16, #tpu.memory_space<vmem>>, vector<1x1x1x8x8x4xbf16>
    %9 = vector.shape_cast %8 : vector<1x1x1x8x8x4xbf16> to vector<8x8x4xbf16>
    %10 = vector.shape_cast %9 : vector<8x8x4xbf16> to vector<64x4xbf16>
    %c0_18 = arith.constant 0 : index
    %c0_19 = arith.constant 0 : index
    %c0_20 = arith.constant 0 : index
    %c0_21 = arith.constant 0 : index
    %11 = vector.load %arg5[%c0_18, %c0_19, %c0_20, %c0_21] : memref<3x3x4x4xbf16, #tpu.memory_space<vmem>>, vector<1x1x4x4xbf16>
    %12 = vector.shape_cast %11 : vector<1x1x4x4xbf16> to vector<4x4xbf16>
    %cst = arith.constant dense<0.000000e+00> : vector<64x4xf32>
    %13 = tpu.matmul %10, %12, %cst {dimension_numbers = #tpu.dot_dimension_numbers<[1], [0], [0], [1], [0, 0, 1, 1], [], []>} : vector<64x4xbf16>, vector<4x4xbf16>, vector<64x4xf32> -> vector<64x4xf32>
    %14 = arith.addf %2, %13 : vector<64x4xf32>
    %c0_22 = arith.constant 0 : index
    %c0_23 = arith.constant 0 : index
    %c1_24 = arith.constant 1 : index
    %c0_25 = arith.constant 0 : index
    %c0_26 = arith.constant 0 : index
    %c0_27 = arith.constant 0 : index
    %15 = vector.load %arg3[%c0_22, %c0_23, %c1_24, %c0_25, %c0_26, %c0_27] : memref<1x2x2x8x9x4xbf16, #tpu.memory_space<vmem>>, vector<1x1x1x8x8x4xbf16>
    %16 = vector.shape_cast %15 : vector<1x1x1x8x8x4xbf16> to vector<8x8x4xbf16>
    %17 = vector.shape_cast %16 : vector<8x8x4xbf16> to vector<64x4xbf16>
    %c0_28 = arith.constant 0 : index
    %c1_29 = arith.constant 1 : index
    %c0_30 = arith.constant 0 : index
    %c0_31 = arith.constant 0 : index
    %18 = vector.load %arg5[%c0_28, %c1_29, %c0_30, %c0_31] : memref<3x3x4x4xbf16, #tpu.memory_space<vmem>>, vector<1x1x4x4xbf16>
    %19 = vector.shape_cast %18 : vector<1x1x4x4xbf16> to vector<4x4xbf16>
    %cst_32 = arith.constant dense<0.000000e+00> : vector<64x4xf32>
    %20 = tpu.matmul %17, %19, %cst_32 {dimension_numbers = #tpu.dot_dimension_numbers<[1], [0], [0], [1], [0, 0, 1, 1], [], []>} : vector<64x4xbf16>, vector<4x4xbf16>, vector<64x4xf32> -> vector<64x4xf32>
    %21 = arith.addf %14, %20 : vector<64x4xf32>
    %c0_33 = arith.constant 0 : index
    %c0_34 = arith.constant 0 : index
    %c0_35 = arith.constant 0 : index
    %c0_36 = arith.constant 0 : index
    %c1_37 = arith.constant 1 : index
    %c0_38 = arith.constant 0 : index
    %22 = vector.load %arg3[%c0_33, %c0_34, %c0_35, %c0_36, %c1_37, %c0_38] : memref<1x2x2x8x9x4xbf16, #tpu.memory_space<vmem>>, vector<1x1x1x8x8x4xbf16>
    %23 = vector.shape_cast %22 : vector<1x1x1x8x8x4xbf16> to vector<8x8x4xbf16>
    %24 = vector.shape_cast %23 : vector<8x8x4xbf16> to vector<64x4xbf16>
    %c0_39 = arith.constant 0 : index
    %c2 = arith.constant 2 : index
    %c0_40 = arith.constant 0 : index
    %c0_41 = arith.constant 0 : index
    %25 = vector.load %arg5[%c0_39, %c2, %c0_40, %c0_41] : memref<3x3x4x4xbf16, #tpu.memory_space<vmem>>, vector<1x1x4x4xbf16>
    %26 = vector.shape_cast %25 : vector<1x1x4x4xbf16> to vector<4x4xbf16>
    %cst_42 = arith.constant dense<0.000000e+00> : vector<64x4xf32>
    %27 = tpu.matmul %24, %26, %cst_42 {dimension_numbers = #tpu.dot_dimension_numbers<[1], [0], [0], [1], [0, 0, 1, 1], [], []>} : vector<64x4xbf16>, vector<4x4xbf16>, vector<64x4xf32> -> vector<64x4xf32>
    %28 = arith.addf %21, %27 : vector<64x4xf32>
    %c0_43 = arith.constant 0 : index
    %c1_44 = arith.constant 1 : index
    %c0_45 = arith.constant 0 : index
    %c0_46 = arith.constant 0 : index
    %c0_47 = arith.constant 0 : index
    %c0_48 = arith.constant 0 : index
    %29 = vector.load %arg3[%c0_43, %c1_44, %c0_45, %c0_46, %c0_47, %c0_48] : memref<1x2x2x8x9x4xbf16, #tpu.memory_space<vmem>>, vector<1x1x1x8x8x4xbf16>
    %30 = vector.shape_cast %29 : vector<1x1x1x8x8x4xbf16> to vector<8x8x4xbf16>
    %31 = vector.shape_cast %30 : vector<8x8x4xbf16> to vector<64x4xbf16>
    %c1_49 = arith.constant 1 : index
    %c0_50 = arith.constant 0 : index
    %c0_51 = arith.constant 0 : index
    %c0_52 = arith.constant 0 : index
    %32 = vector.load %arg5[%c1_49, %c0_50, %c0_51, %c0_52] : memref<3x3x4x4xbf16, #tpu.memory_space<vmem>>, vector<1x1x4x4xbf16>
    %33 = vector.shape_cast %32 : vector<1x1x4x4xbf16> to vector<4x4xbf16>
    %cst_53 = arith.constant dense<0.000000e+00> : vector<64x4xf32>
    %34 = tpu.matmul %31, %33, %cst_53 {dimension_numbers = #tpu.dot_dimension_numbers<[1], [0], [0], [1], [0, 0, 1, 1], [], []>} : vector<64x4xbf16>, vector<4x4xbf16>, vector<64x4xf32> -> vector<64x4xf32>
    %35 = arith.addf %28, %34 : vector<64x4xf32>
    %c0_54 = arith.constant 0 : index
    %c1_55 = arith.constant 1 : index
    %c1_56 = arith.constant 1 : index
    %c0_57 = arith.constant 0 : index
    %c0_58 = arith.constant 0 : index
    %c0_59 = arith.constant 0 : index
    %36 = vector.load %arg3[%c0_54, %c1_55, %c1_56, %c0_57, %c0_58, %c0_59] : memref<1x2x2x8x9x4xbf16, #tpu.memory_space<vmem>>, vector<1x1x1x8x8x4xbf16>
    %37 = vector.shape_cast %36 : vector<1x1x1x8x8x4xbf16> to vector<8x8x4xbf16>
    %38 = vector.shape_cast %37 : vector<8x8x4xbf16> to vector<64x4xbf16>
    %c1_60 = arith.constant 1 : index
    %c1_61 = arith.constant 1 : index
    %c0_62 = arith.constant 0 : index
    %c0_63 = arith.constant 0 : index
    %39 = vector.load %arg5[%c1_60, %c1_61, %c0_62, %c0_63] : memref<3x3x4x4xbf16, #tpu.memory_space<vmem>>, vector<1x1x4x4xbf16>
    %40 = vector.shape_cast %39 : vector<1x1x4x4xbf16> to vector<4x4xbf16>
    %cst_64 = arith.constant dense<0.000000e+00> : vector<64x4xf32>
    %41 = tpu.matmul %38, %40, %cst_64 {dimension_numbers = #tpu.dot_dimension_numbers<[1], [0], [0], [1], [0, 0, 1, 1], [], []>} : vector<64x4xbf16>, vector<4x4xbf16>, vector<64x4xf32> -> vector<64x4xf32>
    %42 = arith.addf %35, %41 : vector<64x4xf32>
    %c0_65 = arith.constant 0 : index
    %c1_66 = arith.constant 1 : index
    %c0_67 = arith.constant 0 : index
    %c0_68 = arith.constant 0 : index
    %c1_69 = arith.constant 1 : index
    %c0_70 = arith.constant 0 : index
    %43 = vector.load %arg3[%c0_65, %c1_66, %c0_67, %c0_68, %c1_69, %c0_70] : memref<1x2x2x8x9x4xbf16, #tpu.memory_space<vmem>>, vector<1x1x1x8x8x4xbf16>
    %44 = vector.shape_cast %43 : vector<1x1x1x8x8x4xbf16> to vector<8x8x4xbf16>
    %45 = vector.shape_cast %44 : vector<8x8x4xbf16> to vector<64x4xbf16>
    %c1_71 = arith.constant 1 : index
    %c2_72 = arith.constant 2 : index
    %c0_73 = arith.constant 0 : index
    %c0_74 = arith.constant 0 : index
    %46 = vector.load %arg5[%c1_71, %c2_72, %c0_73, %c0_74] : memref<3x3x4x4xbf16, #tpu.memory_space<vmem>>, vector<1x1x4x4xbf16>
    %47 = vector.shape_cast %46 : vector<1x1x4x4xbf16> to vector<4x4xbf16>
    %cst_75 = arith.constant dense<0.000000e+00> : vector<64x4xf32>
    %48 = tpu.matmul %45, %47, %cst_75 {dimension_numbers = #tpu.dot_dimension_numbers<[1], [0], [0], [1], [0, 0, 1, 1], [], []>} : vector<64x4xbf16>, vector<4x4xbf16>, vector<64x4xf32> -> vector<64x4xf32>
    %49 = arith.addf %42, %48 : vector<64x4xf32>
    %50 = vector.extract_strided_slice %7 {offsets = [0, 0, 0, 0], sizes = [1, 8, 8, 4], strides = [1, 1, 1, 1]} : vector<2x8x9x4xbf16> to vector<1x8x8x4xbf16>
    %51 = vector.shape_cast %50 : vector<1x8x8x4xbf16> to vector<8x8x4xbf16>
    %52 = vector.shape_cast %51 : vector<8x8x4xbf16> to vector<64x4xbf16>
    %c2_76 = arith.constant 2 : index
    %c0_77 = arith.constant 0 : index
    %c0_78 = arith.constant 0 : index
    %c0_79 = arith.constant 0 : index
    %53 = vector.load %arg5[%c2_76, %c0_77, %c0_78, %c0_79] : memref<3x3x4x4xbf16, #tpu.memory_space<vmem>>, vector<1x1x4x4xbf16>
    %54 = vector.shape_cast %53 : vector<1x1x4x4xbf16> to vector<4x4xbf16>
    %cst_80 = arith.constant dense<0.000000e+00> : vector<64x4xf32>
    %55 = tpu.matmul %52, %54, %cst_80 {dimension_numbers = #tpu.dot_dimension_numbers<[1], [0], [0], [1], [0, 0, 1, 1], [], []>} : vector<64x4xbf16>, vector<4x4xbf16>, vector<64x4xf32> -> vector<64x4xf32>
    %56 = arith.addf %49, %55 : vector<64x4xf32>
    %57 = vector.extract_strided_slice %7 {offsets = [1, 0, 0, 0], sizes = [1, 8, 8, 4], strides = [1, 1, 1, 1]} : vector<2x8x9x4xbf16> to vector<1x8x8x4xbf16>
    %58 = vector.shape_cast %57 : vector<1x8x8x4xbf16> to vector<8x8x4xbf16>
    %59 = vector.shape_cast %58 : vector<8x8x4xbf16> to vector<64x4xbf16>
    %c2_81 = arith.constant 2 : index
    %c1_82 = arith.constant 1 : index
    %c0_83 = arith.constant 0 : index
    %c0_84 = arith.constant 0 : index
    %60 = vector.load %arg5[%c2_81, %c1_82, %c0_83, %c0_84] : memref<3x3x4x4xbf16, #tpu.memory_space<vmem>>, vector<1x1x4x4xbf16>
    %61 = vector.shape_cast %60 : vector<1x1x4x4xbf16> to vector<4x4xbf16>
    %cst_85 = arith.constant dense<0.000000e+00> : vector<64x4xf32>
    %62 = tpu.matmul %59, %61, %cst_85 {dimension_numbers = #tpu.dot_dimension_numbers<[1], [0], [0], [1], [0, 0, 1, 1], [], []>} : vector<64x4xbf16>, vector<4x4xbf16>, vector<64x4xf32> -> vector<64x4xf32>
    %63 = arith.addf %56, %62 : vector<64x4xf32>
    %64 = vector.extract_strided_slice %7 {offsets = [0, 0, 1, 0], sizes = [1, 8, 8, 4], strides = [1, 1, 1, 1]} : vector<2x8x9x4xbf16> to vector<1x8x8x4xbf16>
    %65 = vector.shape_cast %64 : vector<1x8x8x4xbf16> to vector<8x8x4xbf16>
    %66 = vector.shape_cast %65 : vector<8x8x4xbf16> to vector<64x4xbf16>
    %c2_86 = arith.constant 2 : index
    %c2_87 = arith.constant 2 : index
    %c0_88 = arith.constant 0 : index
    %c0_89 = arith.constant 0 : index
    %67 = vector.load %arg5[%c2_86, %c2_87, %c0_88, %c0_89] : memref<3x3x4x4xbf16, #tpu.memory_space<vmem>>, vector<1x1x4x4xbf16>
    %68 = vector.shape_cast %67 : vector<1x1x4x4xbf16> to vector<4x4xbf16>
    %cst_90 = arith.constant dense<0.000000e+00> : vector<64x4xf32>
    %69 = tpu.matmul %66, %68, %cst_90 {dimension_numbers = #tpu.dot_dimension_numbers<[1], [0], [0], [1], [0, 0, 1, 1], [], []>} : vector<64x4xbf16>, vector<4x4xbf16>, vector<64x4xf32> -> vector<64x4xf32>
    %70 = arith.addf %63, %69 : vector<64x4xf32>
    %71 = vector.shape_cast %70 : vector<64x4xf32> to vector<8x8x4xf32>
    %c0_91 = arith.constant 0 : index
    %c0_92 = arith.constant 0 : index
    %c0_93 = arith.constant 0 : index
    %c0_94 = arith.constant 0 : index
    %72 = vector.load %arg7[%c0_91, %c0_92, %c0_93, %c0_94] : memref<1x8x8x4xf32, #tpu.memory_space<vmem>>, vector<1x8x8x4xf32>
    %73 = vector.shape_cast %72 : vector<1x8x8x4xf32> to vector<8x8x4xf32>
    %74 = vector.shape_cast %71 : vector<8x8x4xf32> to vector<1x8x8x4xf32>
    tpu.vector_store %arg7[%c0_91, %c0_92, %c0_93, %c0_94], %74 {strides = array<i32>} : memref<1x8x8x4xf32, #tpu.memory_space<vmem>>, vector<1x8x8x4xf32>,
    return
  }
  func.func @transform_0(%arg0: i32, %arg1: i32, %arg2: i32) -> (i32, i32, i32, i32, i32, i32) {
    %c0_i32 = arith.constant 0 : i32
    %c0_i32_0 = arith.constant 0 : i32
    %c0_i32_1 = arith.constant 0 : i32
    %c0_i32_2 = arith.constant 0 : i32
    %c0_i32_3 = arith.constant 0 : i32
    return %arg0, %c0_i32, %c0_i32_0, %arg2, %c0_i32_1, %c0_i32_2 : i32, i32, i32, i32, i32, i32
  }
  func.func @transform_1(%arg0: i32, %arg1: i32, %arg2: i32) -> (i32, i32, i32, i32, i32, i32) {
    %c1_i32 = arith.constant 1 : i32
    %0 = arith.addi %arg2, %c1_i32 : i32
    %c8_i32 = arith.constant 8 : i32
    %1 = arith.muli %0, %c8_i32 : i32
    %c0_i32 = arith.constant 0 : i32
    %c0_i32_0 = arith.constant 0 : i32
    %c0_i32_1 = arith.constant 0 : i32
    %c0_i32_2 = arith.constant 0 : i32
    %c0_i32_3 = arith.constant 0 : i32
    return %arg0, %c0_i32, %c0_i32_0, %1, %c0_i32_1, %c0_i32_2 : i32, i32, i32, i32, i32, i32
  }
  func.func @transform_2(%arg0: i32, %arg1: i32, %arg2: i32) -> (i32, i32, i32, i32) {
    %c0_i32 = arith.constant 0 : i32
    %c0_i32_0 = arith.constant 0 : i32
    %c0_i32_1 = arith.constant 0 : i32
    %c0_i32_2 = arith.constant 0 : i32
    return %c0_i32, %c0_i32_0, %c0_i32_1, %arg1 : i32, i32, i32, i32
  }
  func.func @transform_3(%arg0: i32, %arg1: i32, %arg2: i32) -> (i32, i32) {
    %c0_i32 = arith.constant 0 : i32
    %c0_i32_0 = arith.constant 0 : i32
    return %c0_i32, %arg1 : i32, i32
  }
  func.func @transform_4(%arg0: i32, %arg1: i32, %arg2: i32) -> (i32, i32, i32, i32) {
    %c0_i32 = arith.constant 0 : i32
    %c0_i32_0 = arith.constant 0 : i32
    return %arg0, %arg2, %c0_i32, %arg1 : i32, i32, i32, i32
  }
}

</mosaic_0001>

<bundles_post_ra>
// kernel: downsample.1
= control target key start
LH: loop header
LB: loop body
LE: loop exit
PB: predicated region body
PF: predicated region fallthrough
CT: control target
= control target key end

     0   :  { %s2975_s15 = smov 0   ;;  %s2977_s16 = smov 0   ;;  %s3504_s0 = inlined_call_operand.vmem [shape: bf16[2,2,2,9,9,4], index: 0, kind: input, shape index: {}, may-alias: {0,1}]   ;;  %s3505_s1 = inlined_call_operand.vmem [shape: bf16[2,2,2,9,9,4], index: 1, kind: input, shape index: {}, may-alias: {0,1}]   ;;  %s3506_s2 = inlined_call_operand.vmem [shape: bf16[3,3,4,4], index: 2, kind: input, shape index: {}]   ;;  %s3507_s3 = inlined_call_operand.vmem [shape: f32[1,4], index: 3, kind: input, shape index: {}]   ;;  %s3508_s4 = inlined_call_operand.vmem [shape: f32[2,8,8,4], index: 4, kind: output, shape index: {}]  }
   0x1   :  { %s2979_s17 = smov 0   ;;  %s2981_s18 = smov 0  }
   0x2   :  { %s2983_s19 = smov 0  }
   0x3 LB: > { %s33_s20 = sadd.s32 1, %s2940_s18  ;;  %p49_p1 = scmp.ne.s32.totalorder %s2932_s16, %s2928_s15  ;;  %s2944_s19 = sphi %s2983_s19, %s14_s19   ;;  %s2940_s18 = sphi %s2981_s18, %s3515_s18   ;;  %s2936_s17 = sphi %s2979_s17, %s3514_s17   ;;  %s2932_s16 = sphi %s2977_s16, %s3513_s16   ;;  %s2928_s15 = sphi %s2975_s15, %s3512_s15  }
   0x4   : > { %p35_p0 = scmp.ge.s32.totalorder %s33_s20, 2  ;;  %p50_p2 = scmp.eq.s32.totalorder %s2944_s19, 0 }
   0x5   : > { %s42_s23 = sadd.s32 1, %s2932_s16  ;;  %p2409_p5 = scmp.ge.s32.totalorder %s2944_s19, 2 }
   0x6   : > { %s3517_s20 = smov (%p35_p0, %s33_s20), 0  ;;  %p3006_p3 = por %p50_p2, %p49_p1 }
   0x7   : > { %s37_s22 = ssub.s32 %s2940_s18, %s3517_s20  ;;  %202 = sbr.rel (%p2409_p5) target bundleno = 79 (0x4f), region = 24 }
   0x8   : > { %p40_p4 = scmp.eq.s32.totalorder %s37_s22, 0 }
   0xa   : > { %s3014_s24 = scalar_select %p40_p4, %s2932_s16, %s42_s23  }
   0xe   : > { %205 = sbr.rel (!%p3006_p3) target bundleno = 72 (0x48), region = 28  ;;  %s207_s25 = sand.u32 (%p3006_p3), 1, %s2932_s16  }
   0xf   : > { %s2795_s26 = smul.u32 (%p3006_p3), 288, %s2940_s18  ;;  %s2410_s27 = sshll.u32 (%p3006_p3), %s207_s25, 8 }
  0x10   : > { %s3026_s5 = scalar_lea.vmem (%p3006_p3), [#allocation2], %s2410_s27   ;;  %s3028_s6 = smov (%p3006_p3), 0  }
  0x11   : > { %s3024_s30 = scalar_lea.vmem (%p3006_p3), %s3504_s0, %s2795_s26  }
  0x15 LB: >> { %v241_v0 = vld [vmem:[%s3024_s30] sm:$0xf]  ;;  %v243_v1 = vld [vmem:[%s3024_s30 + $0x4] sm:$0xf]  ;;  %v245_v2 = vld [vmem:[%s3024_s30 + $0x8] sm:$0xf]  ;;  %s2948_s6 = sphi %s3028_s6, %s235_s6  }
  0x16   : >> { %242 = vst [vmem:[%s3026_s5] sm:$0xf] %v241_v0  ;;  %244 = vst [vmem:[%s3026_s5 + $0x4] sm:$0xf] %v243_v1  ;;  %v247_v3 = vld [vmem:[%s3024_s30 + $0xc] sm:$0xf]  ;;  %s235_s6 = sadd.s32 1, %s2948_s6  }
  0x17   : >> { %246 = vst [vmem:[%s3026_s5 + $0x8] sm:$0xf] %v245_v2  ;;  %v249_v4 = vld [vmem:[%s3024_s30 + $0x10] sm:$0xf]  ;;  %v251_v5 = vld [vmem:[%s3024_s30 + $0x14] sm:$0xf] }
  0x18   : >> { %248 = vst [vmem:[%s3026_s5 + $0xc] sm:$0xf] %v247_v3  ;;  %250 = vst [vmem:[%s3026_s5 + $0x10] sm:$0xf] %v249_v4  ;;  %v253_v6 = vld [vmem:[%s3024_s30 + $0x18] sm:$0xf] }
  0x19   : >> { %252 = vst [vmem:[%s3026_s5 + $0x14] sm:$0xf] %v251_v5  ;;  %v255_v7 = vld [vmem:[%s3024_s30 + $0x1c] sm:$0xf]  ;;  %v257_v8 = vld [vmem:[%s3024_s30 + $0x20] sm:$0xf] }
  0x1a   : >> { %254 = vst [vmem:[%s3026_s5 + $0x18] sm:$0xf] %v253_v6  ;;  %256 = vst [vmem:[%s3026_s5 + $0x1c] sm:$0xf] %v255_v7  ;;  %v259_v9 = vld [vmem:[%s3024_s30 + $0x24] sm:$0xf] }
  0x1b   : >> { %258 = vst [vmem:[%s3026_s5 + $0x20] sm:$0xf] %v257_v8  ;;  %v261_v10 = vld [vmem:[%s3024_s30 + $0x28] sm:$0xf]  ;;  %v263_v11 = vld [vmem:[%s3024_s30 + $0x2c] sm:$0xf] }
  0x1c   : >> { %260 = vst [vmem:[%s3026_s5 + $0x24] sm:$0xf] %v259_v9  ;;  %262 = vst [vmem:[%s3026_s5 + $0x28] sm:$0xf] %v261_v10  ;;  %v265_v12 = vld [vmem:[%s3024_s30 + $0x30] sm:$0xf] }
  0x1d   : >> { %264 = vst [vmem:[%s3026_s5 + $0x2c] sm:$0xf] %v263_v11  ;;  %v267_v13 = vld [vmem:[%s3024_s30 + $0x34] sm:$0xf]  ;;  %v269_v14 = vld [vmem:[%s3024_s30 + $0x38] sm:$0xf] }
  0x1e   : >> { %266 = vst [vmem:[%s3026_s5 + $0x30] sm:$0xf] %v265_v12  ;;  %268 = vst [vmem:[%s3026_s5 + $0x34] sm:$0xf] %v267_v13  ;;  %v271_v15 = vld [vmem:[%s3024_s30 + $0x3c] sm:$0xf] }
  0x1f   : >> { %270 = vst [vmem:[%s3026_s5 + $0x38] sm:$0xf] %v269_v14  ;;  %v273_v16 = vld [vmem:[%s3024_s30 + $0x48] sm:$0xf]  ;;  %v275_v17 = vld [vmem:[%s3024_s30 + $0x4c] sm:$0xf] }
  0x20   : >> { %272 = vst [vmem:[%s3026_s5 + $0x3c] sm:$0xf] %v271_v15  ;;  %274 = vst [vmem:[%s3026_s5 + $0x40] sm:$0xf] %v273_v16  ;;  %v277_v18 = vld [vmem:[%s3024_s30 + $0x50] sm:$0xf] }
  0x21   : >> { %276 = vst [vmem:[%s3026_s5 + $0x44] sm:$0xf] %v275_v17  ;;  %v279_v19 = vld [vmem:[%s3024_s30 + $0x54] sm:$0xf]  ;;  %v281_v20 = vld [vmem:[%s3024_s30 + $0x58] sm:$0xf] }
  0x22   : >> { %278 = vst [vmem:[%s3026_s5 + $0x48] sm:$0xf] %v277_v18  ;;  %280 = vst [vmem:[%s3026_s5 + $0x4c] sm:$0xf] %v279_v19  ;;  %v283_v21 = vld [vmem:[%s3024_s30 + $0x5c] sm:$0xf] }
  0x23   : >> { %282 = vst [vmem:[%s3026_s5 + $0x50] sm:$0xf] %v281_v20  ;;  %v285_v22 = vld [vmem:[%s3024_s30 + $0x60] sm:$0xf]  ;;  %v287_v23 = vld [vmem:[%s3024_s30 + $0x64] sm:$0xf] }
  0x24   : >> { %284 = vst [vmem:[%s3026_s5 + $0x54] sm:$0xf] %v283_v21  ;;  %286 = vst [vmem:[%s3026_s5 + $0x58] sm:$0xf] %v285_v22  ;;  %v289_v24 = vld [vmem:[%s3024_s30 + $0x68] sm:$0xf] }
  0x25   : >> { %288 = vst [vmem:[%s3026_s5 + $0x5c] sm:$0xf] %v287_v23  ;;  %v291_v25 = vld [vmem:[%s3024_s30 + $0x6c] sm:$0xf]  ;;  %v293_v26 = vld [vmem:[%s3024_s30 + $0x70] sm:$0xf] }
  0x26   : >> { %290 = vst [vmem:[%s3026_s5 + $0x60] sm:$0xf] %v289_v24  ;;  %292 = vst [vmem:[%s3026_s5 + $0x64] sm:$0xf] %v291_v25  ;;  %v295_v27 = vld [vmem:[%s3024_s30 + $0x74] sm:$0xf] }
  0x27   : >> { %294 = vst [vmem:[%s3026_s5 + $0x68] sm:$0xf] %v293_v26  ;;  %v297_v28 = vld [vmem:[%s3024_s30 + $0x78] sm:$0xf]  ;;  %v299_v29 = vld [vmem:[%s3024_s30 + $0x7c] sm:$0xf] }
  0x28   : >> { %296 = vst [vmem:[%s3026_s5 + $0x6c] sm:$0xf] %v295_v27  ;;  %298 = vst [vmem:[%s3026_s5 + $0x70] sm:$0xf] %v297_v28  ;;  %v301_v30 = vld [vmem:[%s3024_s30 + $0x80] sm:$0xf] }
  0x29   : >> { %300 = vst [vmem:[%s3026_s5 + $0x74] sm:$0xf] %v299_v29  ;;  %v303_v31 = vld [vmem:[%s3024_s30 + $0x84] sm:$0xf]  ;;  %v305_v32 = vld [vmem:[%s3024_s30 + $0x90] sm:$0xf] }
  0x2a   : >> { %302 = vst [vmem:[%s3026_s5 + $0x78] sm:$0xf] %v301_v30  ;;  %304 = vst [vmem:[%s3026_s5 + $0x7c] sm:$0xf] %v303_v31  ;;  %v307_v33 = vld [vmem:[%s3024_s30 + $0x94] sm:$0xf] }
  0x2b   : >> { %306 = vst [vmem:[%s3026_s5 + $0x80] sm:$0xf] %v305_v32  ;;  %v309_v34 = vld [vmem:[%s3024_s30 + $0x98] sm:$0xf]  ;;  %v311_v35 = vld [vmem:[%s3024_s30 + $0x9c] sm:$0xf] }
  0x2c   : >> { %308 = vst [vmem:[%s3026_s5 + $0x84] sm:$0xf] %v307_v33  ;;  %310 = vst [vmem:[%s3026_s5 + $0x88] sm:$0xf] %v309_v34  ;;  %v313_v36 = vld [vmem:[%s3024_s30 + $0xa0] sm:$0xf] }
  0x2d   : >> { %312 = vst [vmem:[%s3026_s5 + $0x8c] sm:$0xf] %v311_v35  ;;  %v315_v37 = vld [vmem:[%s3024_s30 + $0xa4] sm:$0xf]  ;;  %v317_v38 = vld [vmem:[%s3024_s30 + $0xa8] sm:$0xf] }
  0x2e   : >> { %314 = vst [vmem:[%s3026_s5 + $0x90] sm:$0xf] %v313_v36  ;;  %316 = vst [vmem:[%s3026_s5 + $0x94] sm:$0xf] %v315_v37  ;;  %v319_v39 = vld [vmem:[%s3024_s30 + $0xac] sm:$0xf] }
  0x2f   : >> { %318 = vst [vmem:[%s3026_s5 + $0x98] sm:$0xf] %v317_v38  ;;  %v321_v40 = vld [vmem:[%s3024_s30 + $0xb0] sm:$0xf]  ;;  %v323_v41 = vld [vmem:[%s3024_s30 + $0xb4] sm:$0xf] }
  0x30   : >> { %320 = vst [vmem:[%s3026_s5 + $0x9c] sm:$0xf] %v319_v39  ;;  %322 = vst [vmem:[%s3026_s5 + $0xa0] sm:$0xf] %v321_v40  ;;  %v325_v42 = vld [vmem:[%s3024_s30 + $0xb8] sm:$0xf] }
  0x31   : >> { %324 = vst [vmem:[%s3026_s5 + $0xa4] sm:$0xf] %v323_v41  ;;  %v327_v43 = vld [vmem:[%s3024_s30 + $0xbc] sm:$0xf]  ;;  %v329_v44 = vld [vmem:[%s3024_s30 + $0xc0] sm:$0xf] }
  0x32   : >> { %326 = vst [vmem:[%s3026_s5 + $0xa8] sm:$0xf] %v325_v42  ;;  %328 = vst [vmem:[%s3026_s5 + $0xac] sm:$0xf] %v327_v43  ;;  %v331_v45 = vld [vmem:[%s3024_s30 + $0xc4] sm:$0xf] }
  0x33   : >> { %330 = vst [vmem:[%s3026_s5 + $0xb0] sm:$0xf] %v329_v44  ;;  %v333_v46 = vld [vmem:[%s3024_s30 + $0xc8] sm:$0xf]  ;;  %v335_v47 = vld [vmem:[%s3024_s30 + $0xcc] sm:$0xf] }
  0x34   : >> { %332 = vst [vmem:[%s3026_s5 + $0xb4] sm:$0xf] %v331_v45  ;;  %334 = vst [vmem:[%s3026_s5 + $0xb8] sm:$0xf] %v333_v46  ;;  %v337_v48 = vld [vmem:[%s3024_s30 + $0xd8] sm:$0xf] }
  0x35   : >> { %336 = vst [vmem:[%s3026_s5 + $0xbc] sm:$0xf] %v335_v47  ;;  %v339_v49 = vld [vmem:[%s3024_s30 + $0xdc] sm:$0xf]  ;;  %v341_v50 = vld [vmem:[%s3024_s30 + $0xe0] sm:$0xf] }
  0x36   : >> { %338 = vst [vmem:[%s3026_s5 + $0xc0] sm:$0xf] %v337_v48  ;;  %340 = vst [vmem:[%s3026_s5 + $0xc4] sm:$0xf] %v339_v49  ;;  %v343_v51 = vld [vmem:[%s3024_s30 + $0xe4] sm:$0xf] }
  0x37   : >> { %342 = vst [vmem:[%s3026_s5 + $0xc8] sm:$0xf] %v341_v50  ;;  %v345_v52 = vld [vmem:[%s3024_s30 + $0xe8] sm:$0xf]  ;;  %v347_v53 = vld [vmem:[%s3024_s30 + $0xec] sm:$0xf] }
  0x38   : >> { %344 = vst [vmem:[%s3026_s5 + $0xcc] sm:$0xf] %v343_v51  ;;  %346 = vst [vmem:[%s3026_s5 + $0xd0] sm:$0xf] %v345_v52  ;;  %v349_v54 = vld [vmem:[%s3024_s30 + $0xf0] sm:$0xf] }
  0x39   : >> { %348 = vst [vmem:[%s3026_s5 + $0xd4] sm:$0xf] %v347_v53  ;;  %v351_v55 = vld [vmem:[%s3024_s30 + $0xf4] sm:$0xf]  ;;  %v353_v56 = vld [vmem:[%s3024_s30 + $0xf8] sm:$0xf] }
  0x3a   : >> { %350 = vst [vmem:[%s3026_s5 + $0xd8] sm:$0xf] %v349_v54  ;;  %352 = vst [vmem:[%s3026_s5 + $0xdc] sm:$0xf] %v351_v55  ;;  %v355_v57 = vld [vmem:[%s3024_s30 + $0xfc] sm:$0xf] }
  0x3b   : >> { %354 = vst [vmem:[%s3026_s5 + $0xe0] sm:$0xf] %v353_v56  ;;  %v357_v58 = vld [vmem:[%s3024_s30 + $0x100] sm:$0xf]  ;;  %v359_v59 = vld [vmem:[%s3024_s30 + $0x104] sm:$0xf] }
  0x3c   : >> { %356 = vst [vmem:[%s3026_s5 + $0xe4] sm:$0xf] %v355_v57  ;;  %358 = vst [vmem:[%s3026_s5 + $0xe8] sm:$0xf] %v357_v58  ;;  %v361_v60 = vld [vmem:[%s3024_s30 + $0x108] sm:$0xf] }
  0x3d   : >> { %360 = vst [vmem:[%s3026_s5 + $0xec] sm:$0xf] %v359_v59  ;;  %v363_v61 = vld [vmem:[%s3024_s30 + $0x10c] sm:$0xf]  ;;  %v365_v62 = vld [vmem:[%s3024_s30 + $0x110] sm:$0xf] }
  0x3e   : >> { %362 = vst [vmem:[%s3026_s5 + $0xf0] sm:$0xf] %v361_v60  ;;  %364 = vst [vmem:[%s3026_s5 + $0xf4] sm:$0xf] %v363_v61  ;;  %v367_v63 = vld [vmem:[%s3024_s30 + $0x114] sm:$0xf] }
  0x3f   : >> { %366 = vst [vmem:[%s3026_s5 + $0xf8] sm:$0xf] %v365_v62  ;;  %368 = vst [vmem:[%s3026_s5 + $0xfc] sm:$0xf] %v367_v63  ;;  %p234_p6 = scmp.ge.s32.totalorder %s235_s6, 1 }
  0x41   : > { %237 = sbr.rel (!%p234_p6) target bundleno = 21 (0x15), region = 214 }
  0x48 PF: > { %629 = sbr.rel (!%p3006_p3) target bundleno = 79 (0x4f), region = 90  ;;  %s631_s7 = sand.u32 (%p3006_p3), 1, %s2932_s16  }
  0x49   : > { %s2421_s8 = smul.u32 (%p3006_p3), 288, %s2940_s18  ;;  %s2420_s9 = sshll.u32 (%p3006_p3), %s631_s7, 4 }
  0x4a   : > { %s633_s13 = scalar_lea.vmem (%p3006_p3), [#allocation3], %s2420_s9 }
  0x4b   : > { %s2280_s12 = scalar_lea.vmem (%p3006_p3), %s3505_s1, %s2421_s8 }
  0x4c   : > { %v2422_v0 = vld [vmem:[%s2280_s12 + $0x40] sm:$0xff] (%p3006_p3)   ;;  %v2424_v1 = vld [vmem:[%s2280_s12 + $0x88] sm:$0xff] (%p3006_p3)  }
  0x4d   : > { %657 = vst [vmem:[%s633_s13] sm:$0xff] (%p3006_p3), %v2422_v0   ;;  %661 = vst [vmem:[%s633_s13 + $0x8] sm:$0xff] (%p3006_p3), %v2424_v1  }
  0x4f PF: > { %p2426_p7 = scmp.ge.s32.totalorder %s2944_s19, 1  ;;  %p693_p8 = scmp.lt.s32.totalorder %s2944_s19, 3 }
  0x51   : > { %p694_p9 = pnand %p2426_p7, %p693_p8 }
  0x52   : > { %v819_v2 = vld [vmem:[%s3506_s2] sm:$0x3] (!%p694_p9)  ;;  %vm853_vm0 = vcmask (!%p694_p9), 1041408   ;;  %v3179_v3 = vld [vmem:[%s3506_s2 + $0x8] sm:$0x3] (!%p694_p9)  ;;  %s700_s25 = sand.u32 (!%p694_p9), 1, %s2928_s15  }
  0x53   : > { %697 = sbr.rel (%p694_p9) target bundleno = 391 (0x187), region = 131  ;;  %2785 = vmatprep.subr.msk.bf16.mxu1 (!%p694_p9), %vm853_vm0, %v819_v2  ;;  %v855_v4 = vsel (!%p694_p9), %vm853_vm0, %v819_v2, 0  ;;  %2789 = vmatprep.subr.msk.bf16.mxu0 (!%p694_p9), %vm853_vm0, %v3179_v3  ;;  %v3188_v5 = vsel (!%p694_p9), %vm853_vm0, %v3179_v3, 0  ;;  %s2427_s26 = sshll.u32 (!%p694_p9), %s700_s25, 8  ;;  %v2469_v6 = vld [vmem:[%s3506_s2 + $0x2] sm:$0x3] (!%p694_p9) }
  0x54   : > { %2622 = vmatpush3.bf16.msra.mxu1 (!%p694_p9), %v855_v4  ;;  %2662 = vmatpush3.bf16.msra.mxu0 (!%p694_p9), %v3188_v5  ;;  %vm840_vm1 = vcmask (!%p694_p9), 31744   ;;  %v974_v7 = vsel (!%p694_p9), %vm853_vm0, %v2469_v6, 0  ;;  %v2537_v8 = vld [vmem:[%s3506_s2 + $0xa] sm:$0x3] (!%p694_p9)  ;;  %s3200_s5 = scalar_lea.vmem (!%p694_p9), [#allocation2], %s2427_s26  ;;  %s3304_s12 = sshll.u32 (!%p694_p9), %s700_s25, 4 }
  0x55   : > { %v2868_v9 = vld [vmem:[%s3200_s5] ss:$8 sps:$4 sm:$0xff] (!%p694_p9)   ;;  %2786 = vmatprep.subr.msk.bf16.mxu1 (!%p694_p9), %vm853_vm0, %v2469_v6  ;;  %2791 = vmatprep.subr.msk.bf16.mxu0 (!%p694_p9), %vm853_vm0, %v2537_v8  ;;  %vm1065_vm2 = vsmask.f32 (!%p694_p9), 3328  ;;  %v2870_v11 = vld [vmem:[%s3200_s5 + $0x10] ss:$8 sps:$4 sm:$0xff] (!%p694_p9)  }
  0x56   : > { %v2869_v10 = vld [vmem:[%s3200_s5 + $0xc0] ss:$8 sps:$4 sm:$0xff] (!%p694_p9)   ;;  %2623 = vmatprep.mubr.msk.bf16.mxu1 (!%p694_p9), %vm840_vm1, %v2868_v9  ;;  %v2871_v12 = vld [vmem:[%s3200_s5 + $0xd0] ss:$8 sps:$4 sm:$0xff] (!%p694_p9)   ;;  %v1675_v13 = vsel (!%p694_p9), %vm853_vm0, %v2537_v8, 0  ;;  %s3340_s15 = scalar_lea.vmem (!%p694_p9), [#allocation3], %s3304_s12 }
  0x57   : > { %2663 = vmatprep.mubr.msk.bf16.mxu0 (!%p694_p9), %vm840_vm1, %v2869_v10  ;;  %2624 = vmatmul.mubr.msk.bf16.vlgmr.msra.gmra.mrb[0].mxu1 (!%p694_p9), %vm840_vm1, %v2870_v11  ;;  %v2872_v14 = vld [vmem:[%s3200_s5 + $0x20] ss:$8 sps:$4 sm:$0xff] (!%p694_p9)   ;;  %v2873_v15 = vld [vmem:[%s3200_s5 + $0x30] ss:$8 sps:$4 sm:$0xff] (!%p694_p9)   ;;  %vm1066_vm3 = vsmask.f32 (!%p694_p9), 7440 }
  0x58   : > { %2632 = vmatpush3.bf16.msra.mxu1 (!%p694_p9), %v974_v7  ;;  %2664 = vmatmul.mubr.msk.bf16.vlgmr.msra.gmra.mrb[0].mxu0 (!%p694_p9), %vm840_vm1, %v2871_v12  ;;  %v2521_v16 = vld [vmem:[%s3200_s5 + $0x80] sm:$0xf] (!%p694_p9)  ;;  %v2522_v17 = vld [vmem:[%s3200_s5 + $0x84] sm:$0x1] (!%p694_p9)  ;;  %v2523_v18 = vld [vmem:[%s3200_s5 + $0x88] sm:$0xf] (!%p694_p9) }
  0x59   : > { %2672 = vmatpush3.bf16.msra.mxu0 (!%p694_p9), %v1675_v13  ;;  %2627 = vmatprep.mubr.msk.bf16.mxu1 (!%p694_p9), %vm840_vm1, %v2872_v14  ;;  %v1537_v19 = vshrl.u32 (!%p694_p9), %v2521_v16, 16  ;;  %v1540_v20 = vshll.u32 (!%p694_p9), %v2521_v16, 16  ;;  %v2524_v21 = vld [vmem:[%s3200_s5 + $0x8c] sm:$0x1] (!%p694_p9)  ;;  %v1546_v22 = vshll.u32 (!%p694_p9), %v2522_v17, 16  ;;  %v1551_v23 = vshrl.u32 (!%p694_p9), %v2523_v18, 16  ;;  %vm3227_vm4 = vmor (!%p694_p9), %vm1065_vm2, %vm1066_vm3 }
  0x5a   : > { %v1554_v24 = vshll.u32 %v2523_v18, 16  ;;  %v1560_v27 = vshll.u32 %v2524_v21, 16  ;;  %v2525_v28 = vld [vmem:[%s3200_s5 + $0x90] sm:$0xf]  ;;  %v2526_v32 = vld [vmem:[%s3200_s5 + $0x94] sm:$0x1] }
  0x5b   : > { %v1539_v25 = vrot.slane %v1537_v19, 4  ;;  %v1542_v26 = vrot.slane %v1540_v20, 5  ;;  %v1548_v29 = vrot.slane %v1546_v22, 5  ;;  %v1553_v30 = vrot.slane %v1551_v23, 4  ;;  %v2527_v36 = vld [vmem:[%s3200_s5 + $0x98] sm:$0xf] }
  0x5c   : > { %v1556_v31 = vrot.slane %v1554_v24, 5  ;;  %v1565_v33 = vshrl.u32 %v2525_v28, 16  ;;  %v1562_v35 = vrot.slane %v1560_v27, 5  ;;  %v2528_v37 = vld [vmem:[%s3200_s5 + $0x9c] sm:$0x1]  ;;  %v1568_v38 = vshll.u32 %v2525_v28, 16 }
  0x5d   : > { %v1543_v34 = vor.u32 %v1542_v26, %v1539_v25  ;;  %v1574_v42 = vshll.u32 %v2526_v32, 16  ;;  %v1579_v43 = vshrl.u32 %v2527_v36, 16  ;;  %v2546_v44 = vld [vmem:[%s3506_s2 + $0xc] sm:$0x3]  ;;  %v1582_v47 = vshll.u32 %v2527_v36, 16  ;;  %p766_p10 = scmp.lt.s32.totalorder %s2936_s17, 1 }
  0x5e   : > { %v1557_v40 = vor.u32 %v1556_v31, %v1553_v30  ;;  %v1567_v41 = vrot.slane %v1565_v33, 4  ;;  %v1570_v46 = vrot.slane %v1568_v38, 5  ;;  %v1588_v48 = vshll.u32 %v2528_v37, 16  ;;  %2792 = vmatprep.subr.msk.bf16.mxu0 %vm853_vm0, %v2546_v44  ;;  %v2874_v57 = vld [vmem:[%s3200_s5 + $0x40] ss:$8 sps:$4 sm:$0xff]  }
  0x5f   : > { %2628 = vmatmul.mubr.msk.bf16.gmra.mrb[4].mxu1 %vm840_vm1, %v2873_v15  ;;  %v1544_v45 = vrot.slane %v1543_v34, 4  ;;  %v1576_v50 = vrot.slane %v1574_v42, 5  ;;  %v1581_v51 = vrot.slane %v1579_v43, 4  ;;  %v1785_v52 = vsel %vm853_vm0, %v2546_v44, 0  ;;  %v2478_v58 = vld [vmem:[%s3506_s2 + $0x4] sm:$0x3] }
  0x60   : > { %v1558_v49 = vrot.slane %v1557_v40, 4  ;;  %v1571_v54 = vor.u32 %v1570_v46, %v1567_v41  ;;  %v1584_v55 = vrot.slane %v1582_v47, 5  ;;  %v1590_v56 = vrot.slane %v1588_v48, 5  ;;  %2787 = vmatprep.subr.msk.bf16.mxu1 %vm853_vm0, %v2478_v58  ;;  %v2875_v60 = vld [vmem:[%s3200_s5 + $0x50] ss:$8 sps:$4 sm:$0xff]   ;;  %2633 = vmatprep.mubr.msk.bf16.mxu1 %vm840_vm1, %v2874_v57  ;;  %s3519_s17 = smov (!%p766_p10, %s2936_s17), 1 }
  0x61   : > { %v1549_v53 = vsel %vm3227_vm4, %v1544_v45, %v1548_v29  ;;  %v1207_v0 = vsel %vm853_vm0, %v2478_v58, 0  ;;  %v2529_v1 = vld [vmem:[%s3200_s5 + $0xa0] sm:$0xf]  ;;  %v2530_v2 = vld [vmem:[%s3200_s5 + $0xa4] sm:$0x1]  ;;  %s2575_s26 = sshll.u32 %s3519_s17, 6 }
  0x62   : > { %v1563_v59 = vsel %vm3227_vm4, %v1558_v49, %v1562_v35  ;;  %v1572_v62 = vrot.slane %v1571_v54, 4  ;;  %v1585_v63 = vor.u32 %v1584_v55, %v1581_v51  ;;  %v2531_v4 = vld [vmem:[%s3200_s5 + $0xa8] sm:$0xf]  ;;  %v2532_v6 = vld [vmem:[%s3200_s5 + $0xac] sm:$0x1]  ;;  %v1593_v7 = vshrl.u32 %v2529_v1, 16  ;;  %s3471_s29 = scalar_lea.vmem %s3508_s4, %s2575_s26 }
  0x63   : > { %v2538_v61 = vcombine.low %v1549_v53, %v1563_v59  ;;  %v1596_v8 = vshll.u32 %v2529_v1, 16  ;;  %v1602_v11 = vshll.u32 %v2530_v2, 16  ;;  %v1607_v12 = vshrl.u32 %v2531_v4, 16  ;;  %v2533_v13 = vld [vmem:[%s3200_s5 + $0xb0] sm:$0xf] }
  0x64   : > { %v1577_v9 = vsel %vm3227_vm4, %v1572_v62, %v1576_v50  ;;  %v1586_v10 = vrot.slane %v1585_v63, 4  ;;  %v1595_v14 = vrot.slane %v1593_v7, 4  ;;  %v1610_v16 = vshll.u32 %v2531_v4, 16  ;;  %v2534_v18 = vld [vmem:[%s3200_s5 + $0xb4] sm:$0x1] }
  0x65   : > { %2673 = vmatprep.mubr.msk.bf16.mxu0 %vm840_vm1, %v2538_v61  ;;  %v1598_v15 = vrot.slane %v1596_v8, 5  ;;  %v1616_v17 = vshll.u32 %v2532_v6, 16  ;;  %v1604_v20 = vrot.slane %v1602_v11, 5  ;;  %v1609_v21 = vrot.slane %v1607_v12, 4  ;;  %v2535_v22 = vld [vmem:[%s3200_s5 + $0xb8] sm:$0xf] }
  0x66   : > { %v1591_v19 = vsel %vm3227_vm4, %v1586_v10, %v1590_v56  ;;  %v2536_v23 = vld [vmem:[%s3200_s5 + $0xbc] sm:$0x1]  ;;  %v1612_v26 = vrot.slane %v1610_v16, 5  ;;  %v1621_v28 = vshrl.u32 %v2533_v13, 16  ;;  %v1624_v29 = vshll.u32 %v2533_v13, 16 }
  0x67   : > { %2634 = vmatmul.mubr.msk.bf16.vlgmr.msra.gmra.mrb[0].mxu1 %vm840_vm1, %v2875_v60  ;;  %v2539_v24 = vcombine.low %v1577_v9, %v1591_v19  ;;  %v1599_v25 = vor.u32 %v1598_v15, %v1595_v14  ;;  %v1618_v27 = vrot.slane %v1616_v17, 5  ;;  %v1630_v30 = vshll.u32 %v2534_v18, 16  ;;  %v2876_v32 = vld [vmem:[%s3200_s5 + $0x60] ss:$8 sps:$4 sm:$0xff]   ;;  %v2877_v44 = vld [vmem:[%s3200_s5 + $0x70] ss:$8 sps:$4 sm:$0xff]  }
  0x68   : > { %2642 = vmatpush3.bf16.msra.mxu1 %v1207_v0  ;;  %v1635_v31 = vshrl.u32 %v2535_v22, 16  ;;  %v1613_v34 = vor.u32 %v1612_v26, %v1609_v21  ;;  %v1638_v35 = vshll.u32 %v2535_v22, 16  ;;  %v1644_v36 = vshll.u32 %v2536_v23, 16  ;;  %2637 = vmatprep.mubr.msk.bf16.mxu1 %vm840_vm1, %v2876_v32  ;;  %v2432_v47 = vld [vmem:[%s3200_s5 + $0x8] sm:$0xf] }
  0x69   : > { %2674 = vmatmul.mubr.msk.bf16.vlgmr.msra.gmra.mrb[0].mxu0 %vm840_vm1, %v2539_v24  ;;  %v1600_v33 = vrot.slane %v1599_v25, 4  ;;  %v1623_v37 = vrot.slane %v1621_v28, 4  ;;  %v1626_v38 = vrot.slane %v1624_v29, 5  ;;  %v1632_v46 = vrot.slane %v1630_v30, 5  ;;  %v2434_v48 = vld [vmem:[%s3200_s5 + $0x10] sm:$0xf] }
  0x6a   : > { %2682 = vmatpush3.bf16.msra.mxu0 %v1785_v52  ;;  %v1637_v40 = vrot.slane %v1635_v31, 4  ;;  %v1614_v42 = vrot.slane %v1613_v34, 4  ;;  %v1640_v43 = vrot.slane %v1638_v35, 5  ;;  %v1646_v51 = vrot.slane %v1644_v36, 5  ;;  %v3274_v53 = vld [vmem:[%s3200_s5 + $0x18] sm:$0xf] }
  0x6b   : > { %v1605_v41 = vsel %vm3227_vm4, %v1600_v33, %v1604_v20  ;;  %v1627_v45 = vor.u32 %v1626_v38, %v1623_v37  ;;  %v1971_v52 = vshrl.u32 %v2432_v47, 16  ;;  %v2555_v54 = vld [vmem:[%s3506_s2 + $0xe] sm:$0x3]  ;;  %v1974_v57 = vshll.u32 %v2432_v47, 16  ;;  %v3280_v59 = vld [vmem:[%s3200_s5 + $0x20] sm:$0xf] }
  0x6c   : > { %v1619_v49 = vsel %vm3227_vm4, %v1614_v42, %v1618_v27  ;;  %v1641_v50 = vor.u32 %v1640_v43, %v1637_v40  ;;  %v1985_v58 = vshrl.u32 %v2434_v48, 16  ;;  %2793 = vmatprep.subr.msk.bf16.mxu0 %vm853_vm0, %v2555_v54  ;;  %v2547_v61 = vcombine.low %v2432_v47, %v2434_v48  ;;  %v1049_v0 = vld [vmem:[%s3200_s5] sm:$0xf]  ;;  %v1050_v7 = vld [vmem:[%s3200_s5 + $0x4] sm:$0x1] }
  0x6d   : > { %v2540_v55 = vcombine.low %v1605_v41, %v1619_v49  ;;  %v1628_v56 = vrot.slane %v1627_v45, 4  ;;  %v3283_v62 = vrot.slane %v1971_v52, 4  ;;  %v1988_v63 = vshll.u32 %v2434_v48, 16  ;;  %v1051_v12 = vld [vmem:[%s3200_s5 + $0x8] sm:$0xf] }
  0x6e   : > { %v1642_v60 = vrot.slane %v1641_v50, 4  ;;  %v3289_v2 = vrot.slane %v1974_v57, 5  ;;  %v3291_v4 = vrot.slane %v1985_v58, 4  ;;  %v1999_v6 = vshrl.u32 %v3274_v53, 16  ;;  %v1052_v17 = vld [vmem:[%s3200_s5 + $0xc] sm:$0x1] }
  0x6f   : > { %2638 = vmatmul.mubr.msk.bf16.gmra.mrb[4].mxu1 %vm840_vm1, %v2877_v44  ;;  %2677 = vmatprep.mubr.msk.bf16.mxu0 %vm840_vm1, %v2540_v55  ;;  %v1633_v1 = vsel %vm3227_vm4, %v1628_v56, %v1632_v46  ;;  %v3297_v9 = vrot.slane %v1988_v63, 5  ;;  %v2002_v10 = vshll.u32 %v3274_v53, 16  ;;  %v2013_v11 = vshrl.u32 %v3280_v59, 16  ;;  %v3315_v18 = vld [vmem:[%s3506_s2 + $0x6] sm:$0x3] }
  0x70   : > { %v1647_v8 = vsel %vm3227_vm4, %v1642_v60, %v1646_v51  ;;  %v2548_v14 = vcombine.low %v3274_v53, %v3280_v59  ;;  %v3308_v15 = vrot.slane %v1999_v6, 4  ;;  %v2016_v16 = vshll.u32 %v3280_v59, 16  ;;  %2788 = vmatprep.subr.msk.bf16.mxu1 %vm853_vm0, %v3315_v18  ;;  %v1053_v23 = vld [vmem:[%s3200_s5 + $0x10] sm:$0xf]  ;;  %v1054_v28 = vld [vmem:[%s3200_s5 + $0x14] sm:$0x1] }
  0x71   : > { %v2541_v13 = vcombine.low %v1633_v1, %v1647_v8  ;;  %v3317_v19 = vrot.slane %v2002_v10, 5  ;;  %v1895_v20 = vsel %vm853_vm0, %v2555_v54, 0  ;;  %v1069_v21 = vshrl.u32 %v1049_v0, 16  ;;  %v1055_v32 = vld [vmem:[%s3200_s5 + $0x18] sm:$0xf] }
  0x72   : > { %v1072_v22 = vshll.u32 %v1049_v0, 16  ;;  %v3324_v24 = vrot.slane %v2013_v11, 4  ;;  %v1078_v25 = vshll.u32 %v1050_v7, 16  ;;  %v1083_v26 = vshrl.u32 %v1051_v12, 16  ;;  %v1056_v37 = vld [vmem:[%s3200_s5 + $0x1c] sm:$0x1] }
  0x73   : > { %2678 = vmatmul.mubr.msk.bf16.gmra.mrb[4].mxu0 %vm840_vm1, %v2541_v13  ;;  %v1086_v27 = vshll.u32 %v1051_v12, 16  ;;  %v1071_v29 = vrot.slane %v1069_v21, 4  ;;  %v1092_v31 = vshll.u32 %v1052_v17, 16  ;;  %v1097_v33 = vshrl.u32 %v1053_v23, 16  ;;  %v2440_v44 = vld [vmem:[%s3200_s5 + $0x28] sm:$0xf] }
  0x74   : > { %2683 = vmatprep.mubr.msk.bf16.mxu0 %vm840_vm1, %v2547_v61  ;;  %v1074_v30 = vrot.slane %v1072_v22, 5  ;;  %v1080_v34 = vrot.slane %v1078_v25, 5  ;;  %v1085_v35 = vrot.slane %v1083_v26, 4  ;;  %v1100_v38 = vshll.u32 %v1053_v23, 16  ;;  %v2442_v49 = vld [vmem:[%s3200_s5 + $0x30] sm:$0xf] }
  0x75   : > { %v1088_v36 = vrot.slane %v1086_v27, 5  ;;  %v1094_v41 = vrot.slane %v1092_v31, 5  ;;  %v1099_v42 = vrot.slane %v1097_v33, 4  ;;  %v1106_v43 = vshll.u32 %v1054_v28, 16  ;;  %v3343_v7 = vld [vmem:[%s3340_s15] sm:$0xf] }
  0x76   : > { %v1075_v40 = vor.u32 %v1074_v30, %v1071_v29  ;;  %v1102_v46 = vrot.slane %v1100_v38, 5  ;;  %v1111_v47 = vshrl.u32 %v1055_v32, 16  ;;  %v1114_v48 = vshll.u32 %v1055_v32, 16  ;;  %v2444_v8 = vld [vmem:[%s3200_s5 + $0x38] sm:$0xf] }
  0x77   : > { %v1089_v45 = vor.u32 %v1088_v36, %v1085_v35  ;;  %v3332_v50 = vrot.slane %v2016_v16, 5  ;;  %v1108_v52 = vrot.slane %v1106_v43, 5  ;;  %v1120_v53 = vshll.u32 %v1056_v37, 16  ;;  %v1057_v13 = vld [vmem:[%s3200_s5 + $0x20] sm:$0xf] }
  0x78   : > { %v1076_v51 = vrot.slane %v1075_v40, 4  ;;  %v1103_v55 = vor.u32 %v1102_v46, %v1099_v42  ;;  %v1113_v56 = vrot.slane %v1111_v47, 4  ;;  %v1116_v57 = vrot.slane %v1114_v48, 5  ;;  %v1059_v22 = vld [vmem:[%s3200_s5 + $0x28] sm:$0xf] }
  0x79   : > { %v1090_v54 = vrot.slane %v1089_v45, 4  ;;  %v1122_v59 = vrot.slane %v1120_v53, 5  ;;  %v2549_v60 = vcombine.low %v2440_v44, %v2442_v49  ;;  %v2027_v61 = vshrl.u32 %v2440_v44, 16  ;;  %v1060_v23 = vld [vmem:[%s3200_s5 + $0x2c] sm:$0x1] }
  0x7a   : > { %v1081_v58 = vsel %vm3227_vm4, %v1076_v51, %v1080_v34  ;;  %v1104_v0 = vrot.slane %v1103_v55, 4  ;;  %v1117_v1 = vor.u32 %v1116_v57, %v1113_v56  ;;  %v2030_v6 = vshll.u32 %v2440_v44, 16  ;;  %v1061_v28 = vld [vmem:[%s3200_s5 + $0x30] sm:$0xf]  ;;  %v1062_v32 = vld [vmem:[%s3200_s5 + $0x34] sm:$0x1] }
  0x7b   : > { %2684 = vmatmul.mubr.msk.bf16.vlgmr.msra.gmra.mrb[0].mxu0 %vm840_vm1, %v2548_v14  ;;  %v1095_v63 = vsel %vm3227_vm4, %v1090_v54, %v1094_v41  ;;  %v2041_v11 = vshrl.u32 %v2442_v49, 16  ;;  %v2044_v12 = vshll.u32 %v2442_v49, 16  ;;  %v1058_v14 = vld [vmem:[%s3200_s5 + $0x24] sm:$0x1]  ;;  %v1326_v21 = vsel %vm853_vm0, %v3315_v18, 0 }
  0x7c   : > { %2692 = vmatpush3.bf16.msra.mxu0 %v1895_v20  ;;  %v2479_v10 = vcombine.low %v1081_v58, %v1095_v63  ;;  %2687 = vmatprep.mubr.msk.bf16.mxu0 %vm840_vm1, %v2549_v60  ;;  %v1109_v16 = vsel %vm3227_vm4, %v1104_v0, %v1108_v52  ;;  %v1118_v17 = vrot.slane %v1117_v1, 4  ;;  %v3356_v20 = vrot.slane %v2027_v61, 4  ;;  %v1063_v37 = vld [vmem:[%s3200_s5 + $0x38] sm:$0xf]  ;;  %v1064_v43 = vld [vmem:[%s3200_s5 + $0x3c] sm:$0x1] }
  0x7d   : > { %v3358_v25 = vrot.slane %v2030_v6, 5  ;;  %v2550_v26 = vcombine.low %v2444_v8, %v3343_v7  ;;  %v2055_v27 = vshrl.u32 %v2444_v8, 16  ;;  %v3364_v30 = vrot.slane %v2041_v11, 4  ;;  %v2881_v44 = vld [vmem:[%s3200_s5 + $0x48] ss:$8 sps:$4 sm:$0xff]  }
  0x7e   : > { %2643 = vmatprep.mubr.msk.bf16.mxu1 %vm840_vm1, %v2479_v10  ;;  %v1123_v29 = vsel %vm3227_vm4, %v1118_v17, %v1122_v59  ;;  %v2058_v18 = vshll.u32 %v2444_v8, 16  ;;  %v1125_v31 = vshrl.u32 %v1057_v13, 16  ;;  %v3367_v34 = vrot.slane %v2044_v12, 5  ;;  %v2564_v63 = vld [vmem:[%s3506_s2 + $0x10] sm:$0x3] }
  0x7f   : > { %v2480_v33 = vcombine.low %v1109_v16, %v1123_v29  ;;  %v2069_v35 = vshrl.u32 %v3343_v7, 16  ;;  %v1128_v36 = vshll.u32 %v1057_v13, 16  ;;  %v3371_v38 = vrot.slane %v2055_v27, 4  ;;  %2794 = vmatprep.subr.msk.bf16.mxu0 %vm853_vm0, %v2564_v63  ;;  %v2882_v11 = vld [vmem:[%s3200_s5 + $0x58] ss:$8 sps:$4 sm:$0xff]  }
  0x80   : > { %v2072_v40 = vshll.u32 %v3343_v7, 16  ;;  %v1127_v41 = vrot.slane %v1125_v31, 4  ;;  %v1134_v42 = vshll.u32 %v1058_v14, 16  ;;  %v1139_v46 = vshrl.u32 %v1059_v22, 16  ;;  %v2452_v31 = vld [vmem:[%s3200_s5 + $0x78] sm:$0xf] }
  0x81   : > { %2644 = vmatmul.mubr.msk.bf16.vlgmr.msra.gmra.mrb[0].mxu1 %vm840_vm1, %v2480_v33  ;;  %v1130_v45 = vrot.slane %v1128_v36, 5  ;;  %v1142_v47 = vshll.u32 %v1059_v22, 16  ;;  %v1148_v48 = vshll.u32 %v1060_v23, 16  ;;  %v3378_v49 = vrot.slane %v2058_v18, 5  ;;  %v788_v18 = vld [vmem:[%s3340_s15 + $0x8] sm:$0xf] }
  0x82   : > { %2652 = vmatpush3.bf16.msra.mxu1 %v1326_v21  ;;  %v1136_v51 = vrot.slane %v1134_v42, 5  ;;  %v1153_v52 = vshrl.u32 %v1061_v28, 16  ;;  %v1156_v53 = vshll.u32 %v1061_v28, 16  ;;  %v1141_v55 = vrot.slane %v1139_v46, 4  ;;  %v2885_v28 = vld [vmem:[%s3200_s5 + $0x68] ss:$8 sps:$4 sm:$0xff]  }
  0x83   : > { %2688 = vmatmul.mubr.msk.bf16.gmra.mrb[4].mxu0 %vm840_vm1, %v2550_v26  ;;  %v1131_v54 = vor.u32 %v1130_v45, %v1127_v41  ;;  %v1144_v56 = vrot.slane %v1142_v47, 5  ;;  %v1162_v57 = vshll.u32 %v1062_v32, 16  ;;  %2790 = vmatprep.subr.msk.bf16.mxu1 %vm853_vm0, %v3179_v3  ;;  %v1150_v58 = vrot.slane %v1148_v48, 5  ;;  %v2437_v45 = vld [vmem:[%s3200_s5 + $0x1c] sm:$0x1] }
  0x84   : > { %2693 = vmatprep.mubr.msk.bf16.mxu0 %vm840_vm1, %v2881_v44  ;;  %v1155_v59 = vrot.slane %v1153_v52, 4  ;;  %v1158_v60 = vrot.slane %v1156_v53, 5  ;;  %v1167_v61 = vshrl.u32 %v1063_v37, 16  ;;  %v1170_v6 = vshll.u32 %v1063_v37, 16  ;;  %v2435_v44 = vld [vmem:[%s3200_s5 + $0x14] sm:$0x1] }
  0x85   : > { %v1132_v0 = vrot.slane %v1131_v54, 4  ;;  %v1145_v1 = vor.u32 %v1144_v56, %v1141_v55  ;;  %v1176_v7 = vshll.u32 %v1064_v43, 16  ;;  %v3387_v8 = vrot.slane %v2069_v35, 4  ;;  %v2433_v43 = vld [vmem:[%s3200_s5 + $0xc] sm:$0x1] }
  0x86   : > { %v1159_v10 = vor.u32 %v1158_v60, %v1155_v59  ;;  %v1169_v3 = vrot.slane %v1167_v61, 4  ;;  %v1164_v14 = vrot.slane %v1162_v57, 5  ;;  %v1172_v16 = vrot.slane %v1170_v6, 5  ;;  %v2439_v46 = vld [vmem:[%s3200_s5 + $0x24] sm:$0x1] }
  0x87   : > { %v1137_v12 = vsel %vm3227_vm4, %v1132_v0, %v1136_v51  ;;  %v1146_v13 = vrot.slane %v1145_v1, 4  ;;  %v1178_v21 = vrot.slane %v1176_v7, 5  ;;  %v2109_v22 = vsel %vm853_vm0, %v2564_v63, 0  ;;  %v2441_v54 = vld [vmem:[%s3200_s5 + $0x2c] sm:$0x1] }
  0x88   : > { %v1160_v17 = vrot.slane %v1159_v10, 4  ;;  %v1977_v23 = vor.u32 %v3289_v2, %v3283_v62  ;;  %v1173_v27 = vor.u32 %v1172_v16, %v1169_v3  ;;  %v1991_v32 = vor.u32 %v3297_v9, %v3291_v4  ;;  %v2883_v2 = vld [vmem:[%s3200_s5 + $0x80] ss:$8 sps:$4 sm:$0xff]   ;;  %v2443_v55 = vld [vmem:[%s3200_s5 + $0x34] sm:$0x1] }
  0x89   : > { %v1151_v26 = vsel %vm3227_vm4, %v1146_v13, %v1150_v58  ;;  %v2005_v35 = vor.u32 %v3317_v19, %v3308_v15  ;;  %v2019_v36 = vor.u32 %v3332_v50, %v3324_v24  ;;  %v2074_v37 = vrot.slane %v2072_v40, 5  ;;  %v2884_v6 = vld [vmem:[%s3200_s5 + $0x90] ss:$8 sps:$4 sm:$0xff]   ;;  %v2886_v10 = vld [vmem:[%s3200_s5 + $0xa0] ss:$8 sps:$4 sm:$0xff]  }
  0x8a   : > { %v2481_v29 = vcombine.low %v1137_v12, %v1151_v26  ;;  %v1165_v33 = vsel %vm3227_vm4, %v1160_v17, %v1164_v14  ;;  %v1174_v62 = vrot.slane %v1173_v27, 4  ;;  %v1978_v4 = vrot.slane %v1977_v23, 4 }
  0x8b   : > { %2694 = vmatmul.mubr.msk.bf16.vlgmr.msra.gmra.mrb[0].mxu0 %vm840_vm1, %v2882_v11  ;;  %v2033_v9 = vor.u32 %v3358_v25, %v3356_v20  ;;  %v2559_v42 = vcombine.low %v2452_v31, %v788_v18  ;;  %v2047_v15 = vor.u32 %v3367_v34, %v3364_v30  ;;  %v1980_v24 = vshll.u32 %v2433_v43, 16  ;;  %v2888_v18 = vld [vmem:[%s3200_s5 + $0xe0] ss:$8 sps:$4 sm:$0xff]  }
  0x8c   : > { %2702 = vmatpush3.bf16.msra.mxu0 %v2109_v22  ;;  %2697 = vmatprep.mubr.msk.bf16.mxu0 %vm840_vm1, %v2885_v28  ;;  %v1179_v41 = vsel %vm3227_vm4, %v1174_v62, %v1178_v21  ;;  %v1992_v50 = vrot.slane %v1991_v32, 4  ;;  %v1994_v40 = vshll.u32 %v2435_v44, 16  ;;  %v2006_v47 = vrot.slane %v2005_v35, 4  ;;  %v2431_v32 = vld [vmem:[%s3507_s3] ss:$0 sm:$0xff] }
  0x8d   : > { %2647 = vmatprep.mubr.msk.bf16.mxu1 %vm840_vm1, %v2481_v29  ;;  %v2482_v19 = vcombine.low %v1165_v33, %v1179_v41  ;;  %v2008_v48 = vshll.u32 %v2437_v45, 16  ;;  %v2020_v20 = vrot.slane %v2019_v36, 4  ;;  %v2022_v25 = vshll.u32 %v2439_v46, 16  ;;  %v2887_v29 = vld [vmem:[%s3200_s5 + $0xb0] ss:$8 sps:$4 sm:$0xff]  }
  0x8e   : > { %v1982_v51 = vrot.slane %v1980_v24, 5  ;;  %v1996_v52 = vrot.slane %v1994_v40, 5  ;;  %v2034_v53 = vrot.slane %v2033_v9, 4  ;;  %v2061_v56 = vor.u32 %v3378_v49, %v3371_v38  ;;  %v787_v49 = vld [vmem:[%s3340_s15 + $0x4] sm:$0x1] }
  0x8f   : > { %2648 = vmatmul.mubr.msk.bf16.gmra.mrb[4].mxu1 %vm840_vm1, %v2482_v19  ;;  %v2010_v30 = vrot.slane %v2008_v48, 5  ;;  %v2024_v34 = vrot.slane %v2022_v25, 5  ;;  %v2075_v57 = vor.u32 %v2074_v37, %v3387_v8  ;;  %v2036_v60 = vshll.u32 %v2441_v54, 16  ;;  %v2445_v8 = vld [vmem:[%s3200_s5 + $0x3c] sm:$0x1] }
  0x90   : > { %2653 = vmatprep.mubr.msk.bf16.mxu1 %vm840_vm1, %v2883_v2  ;;  %v1983_v58 = vsel %vm3227_vm4, %v1978_v4, %v1982_v51  ;;  %v1997_v59 = vsel %vm3227_vm4, %v1992_v50, %v1996_v52  ;;  %v2048_v61 = vrot.slane %v2047_v15, 4  ;;  %v2050_v38 = vshll.u32 %v2443_v55, 16 }
  0x91   : > { %v2565_v63 = vcombine.low %v1983_v58, %v1997_v59  ;;  %v2011_v0 = vsel %vm3227_vm4, %v2006_v47, %v2010_v30  ;;  %v2025_v1 = vsel %vm3227_vm4, %v2020_v20, %v2024_v34  ;;  %v2038_v7 = vrot.slane %v2036_v60, 5 }
  0x92   : > { %v2052_v3 = vrot.slane %v2050_v38, 5  ;;  %v2064_v11 = vshll.u32 %v2445_v8, 16  ;;  %v2078_v12 = vshll.u32 %v787_v49, 16  ;;  %v2566_v13 = vcombine.low %v2011_v0, %v2025_v1 }
  0x93   : > { %2698 = vmatmul.mubr.msk.bf16.gmra.mrb[4].mxu0 %vm840_vm1, %v2559_v42  ;;  %v2039_v14 = vsel %vm3227_vm4, %v2034_v53, %v2038_v7  ;;  %v2062_v16 = vrot.slane %v2061_v56, 4  ;;  %v2076_v22 = vrot.slane %v2075_v57, 4 }
  0x94   : > { %2703 = vmatprep.mubr.msk.bf16.mxu0 %vm840_vm1, %v2565_v63  ;;  %v2053_v17 = vsel %vm3227_vm4, %v2048_v61, %v2052_v3  ;;  %v2066_v21 = vrot.slane %v2064_v11, 5  ;;  %v2080_v23 = vrot.slane %v2078_v12, 5 }
  0x95   : > { %v2567_v26 = vcombine.low %v2039_v14, %v2053_v17 }
  0x96   : > { %v2067_v27 = vsel %vm3227_vm4, %v2062_v16, %v2066_v21  ;;  %v2081_v28 = vsel %vm3227_vm4, %v2076_v22, %v2080_v23 }
  0x97   : > { %2654 = vmatmul.mubr.msk.bf16.vlgmr.msra.gmra.mrb[0].mxu1 %vm840_vm1, %v2884_v6  ;;  %v2568_v31 = vcombine.low %v2067_v27, %v2081_v28 }
  0x98   : > { %2712 = vmatpush3.bf16.msra.mxu1 %v3188_v5  ;;  %2657 = vmatprep.mubr.msk.bf16.mxu1 %vm840_vm1, %v2886_v10  ;;  %v2889_v5 = vld [vmem:[%s3200_s5 + $0xf0] ss:$8 sps:$4 sm:$0xff]  }
  0x9b   : > { %2704 = vmatmul.mubr.msk.bf16.vlgmr.msra.gmra.mrb[0].mxu0 %vm840_vm1, %v2566_v13 }
  0x9c   : > { %2707 = vmatprep.mubr.msk.bf16.mxu0 %vm840_vm1, %v2567_v26 }
  0x9f   : > { %2658 = vmatmul.mubr.msk.bf16.gmra.mrb[4].mxu1 %vm840_vm1, %v2887_v29 }
  0xa0   : > { %2667 = vmatprep.mubr.msk.bf16.mxu1 %vm840_vm1, %v2888_v18 }
  0xa3   : > { %2708 = vmatmul.mubr.msk.bf16.gmra.mrb[4].mxu0 %vm840_vm1, %v2568_v31 }
  0xab   : > { %2668 = vmatmul.mubr.msk.bf16.vlgmr.msra.gmra.mrb[4].mxu1 %vm840_vm1, %v2889_v5 }
 0x16a   : > { %v2655_v39 = vpop.f32.mrb[0].mxu1 }
 0x16b   : > { %v2713_v33 = vadd.f32 %v2655_v39, %v2431_v32  ;;  %v1362_v62 = vpop.f32.mrb[1].mxu1 }
 0x16c   : > { %v2715_v2 = vadd.f32 %v2431_v32, %v1362_v62  ;;  %v2656_v35 = vpop.f32.mrb[2].mxu1 }
 0x16d   : > { %v2717_v37 = vadd.f32 %v2656_v35, %v2431_v32  ;;  %v1365_v4 = vpop.f32.mrb[3].mxu1 }
 0x16e   : > { %v2705_v36 = vpop.f32.mrb[0].mxu0  ;;  %v2719_v42 = vadd.f32 %v2431_v32, %v1365_v4 }
 0x16f   : > { %v2714_v9 = vadd.f32 %v2713_v33, %v2705_v36  ;;  %v2145_v41 = vpop.f32.mrb[1].mxu0 }
 0x170   : > { %v2716_v43 = vadd.f32 %v2715_v2, %v2145_v41  ;;  %v2706_v44 = vpop.f32.mrb[2].mxu0 }
 0x171   : > { %2186 = vst.msk [vmem:[%s3471_s29 + $0x10] sm:$0xff] %vm840_vm1, %v2714_v9  ;;  %v2718_v45 = vadd.f32 %v2717_v37, %v2706_v44  ;;  %v2148_v15 = vpop.f32.mrb[3].mxu0 }
 0x172   : > { %2184 = vst.msk [vmem:[%s3471_s29] sm:$0xff] %vm840_vm1, %v2716_v43  ;;  %v2720_v19 = vadd.f32 %v2719_v42, %v2148_v15 }
 0x173   : > { %2187 = vst.msk [vmem:[%s3471_s29 + $0x18] sm:$0xff] %vm840_vm1, %v2718_v45 }
 0x174   : > { %2185 = vst.msk [vmem:[%s3471_s29 + $0x8] sm:$0xff] %vm840_vm1, %v2720_v19 }
 0x176   : > { %v2709_v24 = vpop.f32.mrb[4].mxu0 }
 0x177   : > { %v2161_v50 = vpop.f32.mrb[5].mxu0 }
 0x178   : > { %v2710_v40 = vpop.f32.mrb[6].mxu0 }
 0x179   : > { %v2164_v46 = vpop.f32.mrb[7].mxu0 }
 0x17e   : > { %v2669_v47 = vpop.f32.mrb[4].mxu1 }
 0x17f   : > { %v2721_v48 = vadd.f32 %v2669_v47, %v2431_v32  ;;  %v1497_v20 = vpop.f32.mrb[5].mxu1 }
 0x180   : > { %v2723_v25 = vadd.f32 %v2431_v32, %v1497_v20  ;;  %v2670_v51 = vpop.f32.mrb[6].mxu1 }
 0x181   : > { %v2722_v52 = vadd.f32 %v2721_v48, %v2709_v24  ;;  %v2725_v53 = vadd.f32 %v2670_v51, %v2431_v32  ;;  %v1500_v30 = vpop.f32.mrb[7].mxu1 }
 0x182   : > { %v2724_v34 = vadd.f32 %v2723_v25, %v2161_v50  ;;  %v2727_v54 = vadd.f32 %v2431_v32, %v1500_v30 }
 0x183   : > { %2190 = vst.msk [vmem:[%s3471_s29 + $0x30] sm:$0xff] %vm840_vm1, %v2722_v52  ;;  %v2726_v55 = vadd.f32 %v2725_v53, %v2710_v40 }
 0x184   : > { %2188 = vst.msk [vmem:[%s3471_s29 + $0x20] sm:$0xff] %vm840_vm1, %v2724_v34  ;;  %v2728_v56 = vadd.f32 %v2727_v54, %v2164_v46 }
 0x185   : > { %2191 = vst.msk [vmem:[%s3471_s29 + $0x38] sm:$0xff] %vm840_vm1, %v2726_v55 }
 0x186   : > { %2189 = vst.msk [vmem:[%s3471_s29 + $0x28] sm:$0xff] %vm840_vm1, %v2728_v56 }
 0x187 PF: > { %s14_s19 = sadd.s32 1, %s2944_s19   ;;  %s3512_s15 = smov %s2932_s16 }
 0x188   : > { %p11_p11 = scmp.ge.s32.totalorder %s14_s19, 4   ;;  %s3513_s16 = smov %s3014_s24 }
 0x189   : > { %s3514_s17 = smov %s2940_s18  ;;  %s3515_s18 = smov %s3517_s20 }
 0x18a   :  { %13 = sbr.rel (!%p11_p11) target bundleno = 3 (0x3), region = 236 }

</bundles_post_ra>
